<compile_context>
chip_gen: v7x
topology: tpu7x:2x2x1
jax: 0.10.0
libtpu: 0.0.40
codegen_flags: <defaults>
</compile_context>

<pallas_src>
import functools
import math

import jax
import jax.numpy as jnp
from jax.experimental import pallas as pl
from jax.experimental.pallas import tpu as pltpu


def _round_up(n, m):
    return ((n + m - 1) // m) * m


def attention_nn_kernel(
    x_ref,        # (TB, x_dim) bf16  — unpadded lanes
    am_ref,       # (1, X_PAD) f32    — additive softmax mask (0 / -1e30)
    # mask_layers params: weights (in_pad, out_pad) bf16, biases (1, out_pad) f32
    mw1_ref, mb1_ref, mw2_ref, mb2_ref, mw3_ref, mb3_ref, mw4_ref, mb4_ref,
    # reg_layers params
    rw1_ref, rb1_ref, rw2_ref, rb2_ref, rw3_ref, rb3_ref, rw4_ref, rb4_ref,
    out_ref,      # (TB, 128) bf16
    xp_ref,       # scratch: (TB, X_PAD) bf16 — lane-padded copy of x
    *, x_dim,
):
    x_pad = xp_ref.shape[1]

    # Build the lane-padded bf16 x tile in VMEM (padded lanes exactly 0).
    if x_dim != x_pad:                       # trace-time branch (static)
        xp_ref[...] = jnp.zeros_like(xp_ref)
        xp_ref[:, :x_dim] = x_ref[...]
        x = xp_ref[...]                      # (TB, X_PAD) bf16
    else:
        x = x_ref[...]

    def dense(h_bf16, w_ref, b_ref):
        # bf16 MXU inputs, f32 accumulation, f32 bias add.
        return jnp.dot(h_bf16, w_ref[...], preferred_element_type=jnp.float32) + b_ref[...]

    def relu_bf16(a_f32):
        # Single cast back to bf16 per layer (same values the MXU would see anyway).
        return jnp.maximum(a_f32, 0.0).astype(jnp.bfloat16)

    # ---- mask branch (Dropout(p=0.35) = identity in eval) ----
    h = relu_bf16(dense(x, mw1_ref, mb1_ref))            # (TB, 128)
    h = relu_bf16(dense(h, mw2_ref, mb2_ref))            # (TB, 128)
    h = relu_bf16(dense(h, mw3_ref, mb3_ref))            # (TB, 128)
    logits = jnp.maximum(dense(h, mw4_ref, mb4_ref), 0.0)  # (TB, X_PAD) f32, ReLU
    logits = logits + am_ref[...]                        # padded lanes -> -1e30

    # Softmax over features (padded lanes contribute exp(-1e30) = 0).
    m = jnp.max(logits, axis=-1, keepdims=True)
    e = jnp.exp(logits - m)
    denom = jnp.sum(e, axis=-1, keepdims=True)
    mask = e * pl.reciprocal(denom, approx=True)         # EUP vrcp — effectively free

    weighted_x = (mask * x.astype(jnp.float32)).astype(jnp.bfloat16)  # padded lanes stay 0

    # ---- regression branch ----
    r = relu_bf16(dense(weighted_x, rw1_ref, rb1_ref))   # (TB, 256)
    r = relu_bf16(dense(r, rw2_ref, rb2_ref))            # (TB, 256)
    r = relu_bf16(dense(r, rw3_ref, rb3_ref))            # (TB, 128)
    out = jnp.tanh(dense(r, rw4_ref, rb4_ref))           # (TB, 128) f32; cols >= 3 are tanh(0)=0

    out_ref[...] = out.astype(out_ref.dtype)             # lane-dense bf16 store


def attention_nn_forward(x, padded_params, addmask):
    """x: (B, x_dim) f32. padded_params: 16 arrays from pad_params(). addmask: (1, X_PAD) f32.
    Returns (B, 3) f32."""
    B, x_dim = x.shape
    X_PAD = _round_up(x_dim, 128)
    OUT_PAD = 128

    # Batch tiling: whole batch as one grid-less tile when small; 256/512-row tiles
    # otherwise (larger tiles amortize per-step overhead and per-layer weight pushes).
    if B <= 256:
        TILE_B = _round_up(max(B, 8), 8)
    elif B >= 1024:
        TILE_B = 512
    else:
        TILE_B = 256
    B_pad = _round_up(B, TILE_B)
    num_tiles = B_pad // TILE_B

    # Only the batch dim is padded host-side; the lane dim stays at x_dim (bf16).
    xb = x.astype(jnp.bfloat16)
    if B_pad != B:
        xb = jnp.zeros((B_pad, x_dim), jnp.bfloat16).at[:B].set(xb)

    flat = [xb, addmask] + list(padded_params)
    kernel = functools.partial(attention_nn_kernel, x_dim=x_dim)
    out_shape = jax.ShapeDtypeStruct((B_pad, OUT_PAD), jnp.bfloat16)
    scratch = [pltpu.VMEM((TILE_B, X_PAD), jnp.bfloat16)]

    if num_tiles == 1:
        # Single tile: no grid, whole working set resident in VMEM for one invocation.
        # (Launch + weight-DMA latency bound for tiny B; see review note.)
        out = pl.pallas_call(
            kernel,
            out_shape=out_shape,
            in_specs=[pl.BlockSpec(memory_space=pltpu.MemorySpace.VMEM)] * len(flat),
            out_specs=pl.BlockSpec(memory_space=pltpu.MemorySpace.VMEM),
            scratch_shapes=scratch,
        )(*flat)
    else:
        # Batch-tiled: x/out blocked on dim 0; weights/biases/addmask have constant
        # index_maps so their block index never changes -> fetched once, VMEM-resident.
        # NOTE(perf): verify on v7x that the "parallel" batch axis shards across both
        # TensorCores; if not, switch to CORE_PARALLEL / pl.core_map.
        x_spec = pl.BlockSpec((TILE_B, x_dim), lambda i: (i, 0))
        am_spec = pl.BlockSpec(addmask.shape, lambda i: (0, 0))
        w_specs = [pl.BlockSpec(p.shape, lambda i: (0, 0)) for p in padded_params]
        out_spec = pl.BlockSpec((TILE_B, OUT_PAD), lambda i: (i, 0))
        out = pl.pallas_call(
            kernel,
            out_shape=out_shape,
            grid=(num_tiles,),
            in_specs=[x_spec, am_spec] + w_specs,
            out_specs=out_spec,
            scratch_shapes=scratch,
            compiler_params=pltpu.CompilerParams(
                dimension_semantics=("parallel",)),
        )(*flat)

    return out[:B, :3].astype(jnp.float32)


def init_params(key, x_dim):
    """Kaiming-uniform (fan_in, relu gain) weights, zero biases — matches
    weights_init_kaimingUniform for nn.Linear. Weights returned transposed (in, out),
    true (unpadded) shapes, f32."""
    dims_mask = [(x_dim, 64), (64, 128), (128, 64), (64, x_dim)]
    dims_reg = [(x_dim, 200), (200, 200), (200, 10), (10, 3)]
    params = []
    for fan_in, fan_out in dims_mask + dims_reg:
        key, sub = jax.random.split(key)
        bound = math.sqrt(2.0) * math.sqrt(3.0 / fan_in)  # gain*sqrt(3/fan_in)
        w = jax.random.uniform(sub, (fan_in, fan_out), jnp.float32, -bound, bound)
        b = jnp.zeros((1, fan_out), jnp.float32)
        params += [w, b]
    return params


def pad_params(params):
    """Zero-pad every (in, out) to lane multiples of 128; weights -> bf16, biases f32.
    Zero-padded rows/cols are mathematically inert through matmul/ReLU."""
    padded = []
    for w, b in zip(params[0::2], params[1::2]):
        fi, fo = w.shape
        fi_p, fo_p = _round_up(fi, 128), _round_up(fo, 128)
        wp = jnp.zeros((fi_p, fo_p), jnp.bfloat16).at[:fi, :fo].set(w.astype(jnp.bfloat16))
        bp = jnp.zeros((1, fo_p), jnp.float32).at[:, :fo].set(b)
        padded += [wp, bp]
    return padded


def make_softmax_addmask(x_dim):
    """(1, X_PAD) f32 additive mask: 0 for true lanes, -1e30 for padded lanes."""
    x_pad = _round_up(x_dim, 128)
    return jnp.where(jnp.arange(x_pad) < x_dim, 0.0, -1e30).astype(jnp.float32)[None, :]


def reference_forward(x, params):
    """Pure-JAX f32 reference of the true (unpadded) module semantics."""
    (mw1, mb1, mw2, mb2, mw3, mb3, mw4, mb4,
     rw1, rb1, rw2, rb2, rw3, rb3, rw4, rb4) = params
    h = jax.nn.relu(x @ mw1 + mb1)
    h = jax.nn.relu(h @ mw2 + mb2)
    h = jax.nn.relu(h @ mw3 + mb3)
    h = jax.nn.relu(h @ mw4 + mb4)
    mask = jax.nn.softmax(h, axis=-1)
    wx = mask * x
    r = jax.nn.relu(wx @ rw1 + rb1)
    r = jax.nn.relu(r @ rw2 + rb2)
    r = jax.nn.relu(r @ rw3 + rb3)
    return jnp.tanh(r @ rw4 + rb4)


def reference_forward_matched(x, padded_params, x_dim):
    """Pure-JAX reference matching the kernel's padded/bf16 arithmetic
    (exact softmax instead of the approximate EUP reciprocal)."""
    (mw1, mb1, mw2, mb2, mw3, mb3, mw4, mb4,
     rw1, rb1, rw2, rb2, rw3, rb3, rw4, rb4) = padded_params
    x_pad = mw1.shape[0]
    xb = x.astype(jnp.bfloat16)
    x_p = jnp.zeros((x.shape[0], x_pad), jnp.bfloat16).at[:, :x_dim].set(xb)

    def dense(h_bf16, w, b):
        return jnp.dot(h_bf16, w, preferred_element_type=jnp.float32) + b

    def relu_bf16(a):
        return jnp.maximum(a, 0.0).astype(jnp.bfloat16)

    h = relu_bf16(dense(x_p, mw1, mb1))
    h = relu_bf16(dense(h, mw2, mb2))
    h = relu_bf16(dense(h, mw3, mb3))
    logits = jnp.maximum(dense(h, mw4, mb4), 0.0)
    logits = jnp.where(jnp.arange(x_pad) < x_dim, logits, -1e30)
    mask = jax.nn.softmax(logits, axis=-1)
    wx = (mask * x_p.astype(jnp.float32)).astype(jnp.bfloat16)
    r = relu_bf16(dense(wx, rw1, rb1))
    r = relu_bf16(dense(r, rw2, rb2))
    r = relu_bf16(dense(r, rw3, rb3))
    out = jnp.tanh(dense(r, rw4, rb4)).astype(jnp.bfloat16)
    return out[:, :3].astype(jnp.float32)


if __name__ == "__main__":
    key = jax.random.PRNGKey(0)
    k_x1, k_x2, k_x3, k_p = jax.random.split(key, 4)

    X_DIM = 32
    params = init_params(k_p, X_DIM)
    padded = pad_params(params)
    addmask = make_softmax_addmask(X_DIM)

    # ---- small batch: grid-less single-tile path ----
    x_small = jax.random.normal(k_x1, (8, X_DIM), dtype=jnp.float32)
    out_s = jax.block_until_ready(attention_nn_forward(x_small, padded, addmask))
    assert out_s.shape == (8, 3)
    assert jnp.allclose(out_s, reference_forward_matched(x_small, padded, X_DIM),
                        atol=1e-2, rtol=1e-2), "mismatch vs bf16-matched reference (small)"
    assert jnp.allclose(out_s, reference_forward(x_small, params),
                        atol=5e-2, rtol=5e-2), "mismatch vs f32 reference (small)"

    # ---- medium batch: batch-tiled (TILE_B=256), weight-resident, parallel grid ----
    x_med = jax.random.normal(k_x2, (300, X_DIM), dtype=jnp.float32)
    out_m = jax.block_until_ready(attention_nn_forward(x_med, padded, addmask))
    assert out_m.shape == (300, 3)
    assert jnp.allclose(out_m, reference_forward_matched(x_med, padded, X_DIM),
                        atol=1e-2, rtol=1e-2), "mismatch vs bf16-matched reference (medium)"
    assert jnp.allclose(out_m, reference_forward(x_med, params),
                        atol=5e-2, rtol=5e-2), "mismatch vs f32 reference (medium)"

    # ---- large batch: TILE_B=512, 4 grid steps (exercises the big-tile path) ----
    x_large = jax.random.normal(k_x3, (2048, X_DIM), dtype=jnp.float32)
    out_l = jax.block_until_ready(attention_nn_forward(x_large, padded, addmask))
    assert out_l.shape == (2048, 3)
    assert jnp.allclose(out_l, reference_forward_matched(x_large, padded, X_DIM),
                        atol=1e-2, rtol=1e-2), "mismatch vs bf16-matched reference (large)"

    print("KERNEL_OK")
</pallas_src>

<mosaic_0001>
module attributes {stable_mosaic.version = 11 : i64} {
  func.func @attention_nn_kernel(%arg0: memref<8x32xbf16, #tpu.memory_space<vmem>>, %arg1: memref<1x128xf32, #tpu.memory_space<vmem>>, %arg2: memref<128x128xbf16, #tpu.memory_space<vmem>>, %arg3: memref<1x128xf32, #tpu.memory_space<vmem>>, %arg4: memref<128x128xbf16, #tpu.memory_space<vmem>>, %arg5: memref<1x128xf32, #tpu.memory_space<vmem>>, %arg6: memref<128x128xbf16, #tpu.memory_space<vmem>>, %arg7: memref<1x128xf32, #tpu.memory_space<vmem>>, %arg8: memref<128x128xbf16, #tpu.memory_space<vmem>>, %arg9: memref<1x128xf32, #tpu.memory_space<vmem>>, %arg10: memref<128x256xbf16, #tpu.memory_space<vmem>>, %arg11: memref<1x256xf32, #tpu.memory_space<vmem>>, %arg12: memref<256x256xbf16, #tpu.memory_space<vmem>>, %arg13: memref<1x256xf32, #tpu.memory_space<vmem>>, %arg14: memref<256x128xbf16, #tpu.memory_space<vmem>>, %arg15: memref<1x128xf32, #tpu.memory_space<vmem>>, %arg16: memref<128x128xbf16, #tpu.memory_space<vmem>>, %arg17: memref<1x128xf32, #tpu.memory_space<vmem>>, %arg18: memref<8x128xbf16, #tpu.memory_space<vmem>>, %arg19: memref<8x128xbf16, #tpu.memory_space<vmem>>) attributes {dimension_semantics = [], scalar_prefetch = 0 : i64, scratch_operands = 1 : i64, tpu.core_type = #tpu.core_type<tc>} {
    %cst = arith.constant 0.000000e+00 : bf16
    %0 = vector.broadcast %cst : bf16 to vector<8x128xbf16>
    %c0 = arith.constant 0 : index
    %c0_0 = arith.constant 0 : index
    %1 = vector.load %arg19[%c0, %c0_0] : memref<8x128xbf16, #tpu.memory_space<vmem>>, vector<8x128xbf16>
    tpu.vector_store %arg19[%c0, %c0_0], %0 {strides = array<i32>} : memref<8x128xbf16, #tpu.memory_space<vmem>>, vector<8x128xbf16>,
    %c0_1 = arith.constant 0 : index
    %c0_2 = arith.constant 0 : index
    %2 = vector.load %arg0[%c0_1, %c0_2] : memref<8x32xbf16, #tpu.memory_space<vmem>>, vector<8x32xbf16>
    %c0_3 = arith.constant 0 : index
    %c0_4 = arith.constant 0 : index
    %3 = vector.load %arg19[%c0_3, %c0_4] : memref<8x128xbf16, #tpu.memory_space<vmem>>, vector<8x32xbf16>
    tpu.vector_store %arg19[%c0_3, %c0_4], %2 {strides = array<i32>} : memref<8x128xbf16, #tpu.memory_space<vmem>>, vector<8x32xbf16>,
    %c0_5 = arith.constant 0 : index
    %c0_6 = arith.constant 0 : index
    %4 = vector.load %arg19[%c0_5, %c0_6] : memref<8x128xbf16, #tpu.memory_space<vmem>>, vector<8x128xbf16>
    %c0_7 = arith.constant 0 : index
    %c0_8 = arith.constant 0 : index
    %5 = vector.load %arg2[%c0_7, %c0_8] : memref<128x128xbf16, #tpu.memory_space<vmem>>, vector<128x128xbf16>
    %cst_9 = arith.constant dense<0.000000e+00> : vector<8x128xf32>
    %6 = tpu.matmul %4, %5, %cst_9 {dimension_numbers = #tpu.dot_dimension_numbers<[1], [0], [0], [1], [0, 0, 1, 1], [], []>} : vector<8x128xbf16>, vector<128x128xbf16>, vector<8x128xf32> -> vector<8x128xf32>
    %c0_10 = arith.constant 0 : index
    %c0_11 = arith.constant 0 : index
    %7 = vector.load %arg3[%c0_10, %c0_11] : memref<1x128xf32, #tpu.memory_space<vmem>>, vector<1x128xf32>
    %8 = vector.broadcast %7 : vector<1x128xf32> to vector<8x128xf32>
    %9 = arith.addf %6, %8 : vector<8x128xf32>
    %cst_12 = arith.constant 0.000000e+00 : f32
    %10 = vector.broadcast %cst_12 : f32 to vector<8x128xf32>
    %11 = arith.maximumf %9, %10 : vector<8x128xf32>
    %12 = arith.truncf %11 : vector<8x128xf32> to vector<8x128xbf16>
    %c0_13 = arith.constant 0 : index
    %c0_14 = arith.constant 0 : index
    %13 = vector.load %arg4[%c0_13, %c0_14] : memref<128x128xbf16, #tpu.memory_space<vmem>>, vector<128x128xbf16>
    %cst_15 = arith.constant dense<0.000000e+00> : vector<8x128xf32>
    %14 = tpu.matmul %12, %13, %cst_15 {dimension_numbers = #tpu.dot_dimension_numbers<[1], [0], [0], [1], [0, 0, 1, 1], [], []>} : vector<8x128xbf16>, vector<128x128xbf16>, vector<8x128xf32> -> vector<8x128xf32>
    %c0_16 = arith.constant 0 : index
    %c0_17 = arith.constant 0 : index
    %15 = vector.load %arg5[%c0_16, %c0_17] : memref<1x128xf32, #tpu.memory_space<vmem>>, vector<1x128xf32>
    %16 = vector.broadcast %15 : vector<1x128xf32> to vector<8x128xf32>
    %17 = arith.addf %14, %16 : vector<8x128xf32>
    %cst_18 = arith.constant 0.000000e+00 : f32
    %18 = vector.broadcast %cst_18 : f32 to vector<8x128xf32>
    %19 = arith.maximumf %17, %18 : vector<8x128xf32>
    %20 = arith.truncf %19 : vector<8x128xf32> to vector<8x128xbf16>
    %c0_19 = arith.constant 0 : index
    %c0_20 = arith.constant 0 : index
    %21 = vector.load %arg6[%c0_19, %c0_20] : memref<128x128xbf16, #tpu.memory_space<vmem>>, vector<128x128xbf16>
    %cst_21 = arith.constant dense<0.000000e+00> : vector<8x128xf32>
    %22 = tpu.matmul %20, %21, %cst_21 {dimension_numbers = #tpu.dot_dimension_numbers<[1], [0], [0], [1], [0, 0, 1, 1], [], []>} : vector<8x128xbf16>, vector<128x128xbf16>, vector<8x128xf32> -> vector<8x128xf32>
    %c0_22 = arith.constant 0 : index
    %c0_23 = arith.constant 0 : index
    %23 = vector.load %arg7[%c0_22, %c0_23] : memref<1x128xf32, #tpu.memory_space<vmem>>, vector<1x128xf32>
    %24 = vector.broadcast %23 : vector<1x128xf32> to vector<8x128xf32>
    %25 = arith.addf %22, %24 : vector<8x128xf32>
    %cst_24 = arith.constant 0.000000e+00 : f32
    %26 = vector.broadcast %cst_24 : f32 to vector<8x128xf32>
    %27 = arith.maximumf %25, %26 : vector<8x128xf32>
    %28 = arith.truncf %27 : vector<8x128xf32> to vector<8x128xbf16>
    %c0_25 = arith.constant 0 : index
    %c0_26 = arith.constant 0 : index
    %29 = vector.load %arg8[%c0_25, %c0_26] : memref<128x128xbf16, #tpu.memory_space<vmem>>, vector<128x128xbf16>
    %cst_27 = arith.constant dense<0.000000e+00> : vector<8x128xf32>
    %30 = tpu.matmul %28, %29, %cst_27 {dimension_numbers = #tpu.dot_dimension_numbers<[1], [0], [0], [1], [0, 0, 1, 1], [], []>} : vector<8x128xbf16>, vector<128x128xbf16>, vector<8x128xf32> -> vector<8x128xf32>
    %c0_28 = arith.constant 0 : index
    %c0_29 = arith.constant 0 : index
    %31 = vector.load %arg9[%c0_28, %c0_29] : memref<1x128xf32, #tpu.memory_space<vmem>>, vector<1x128xf32>
    %32 = vector.broadcast %31 : vector<1x128xf32> to vector<8x128xf32>
    %33 = arith.addf %30, %32 : vector<8x128xf32>
    %cst_30 = arith.constant 0.000000e+00 : f32
    %34 = vector.broadcast %cst_30 : f32 to vector<8x128xf32>
    %35 = arith.maximumf %33, %34 : vector<8x128xf32>
    %c0_31 = arith.constant 0 : index
    %c0_32 = arith.constant 0 : index
    %36 = vector.load %arg1[%c0_31, %c0_32] : memref<1x128xf32, #tpu.memory_space<vmem>>, vector<1x128xf32>
    %37 = vector.broadcast %36 : vector<1x128xf32> to vector<8x128xf32>
    %38 = arith.addf %35, %37 : vector<8x128xf32>
    %cst_33 = arith.constant dense<0xFF800000> : vector<8xf32>
    %39 = vector.multi_reduction <maximumf>, %38, %cst_33 [1] : vector<8x128xf32> to vector<8xf32>
    %40 = vector.shape_cast %39 : vector<8xf32> to vector<8x1xf32>
    %41 = vector.broadcast %40 : vector<8x1xf32> to vector<8x128xf32>
    %42 = arith.subf %38, %41 : vector<8x128xf32>
    %43 = math.exp %42 : vector<8x128xf32>
    %cst_34 = arith.constant dense<0.000000e+00> : vector<8xf32>
    %44 = vector.multi_reduction <add>, %43, %cst_34 [1] : vector<8x128xf32> to vector<8xf32>
    %45 = vector.shape_cast %44 : vector<8xf32> to vector<8x1xf32>
    %46 = tpu.reciprocal %45 {approx = true} : vector<8x1xf32> -> vector<8x1xf32>
    %47 = vector.broadcast %46 : vector<8x1xf32> to vector<8x128xf32>
    %48 = arith.mulf %43, %47 : vector<8x128xf32>
    %49 = arith.extf %4 : vector<8x128xbf16> to vector<8x128xf32>
    %50 = arith.mulf %48, %49 : vector<8x128xf32>
    %51 = arith.truncf %50 : vector<8x128xf32> to vector<8x128xbf16>
    %c0_35 = arith.constant 0 : index
    %c0_36 = arith.constant 0 : index
    %52 = vector.load %arg10[%c0_35, %c0_36] : memref<128x256xbf16, #tpu.memory_space<vmem>>, vector<128x256xbf16>
    %cst_37 = arith.constant dense<0.000000e+00> : vector<8x256xf32>
    %53 = tpu.matmul %51, %52, %cst_37 {dimension_numbers = #tpu.dot_dimension_numbers<[1], [0], [0], [1], [0, 0, 1, 1], [], []>} : vector<8x128xbf16>, vector<128x256xbf16>, vector<8x256xf32> -> vector<8x256xf32>
    %c0_38 = arith.constant 0 : index
    %c0_39 = arith.constant 0 : index
    %54 = vector.load %arg11[%c0_38, %c0_39] : memref<1x256xf32, #tpu.memory_space<vmem>>, vector<1x256xf32>
    %55 = vector.broadcast %54 : vector<1x256xf32> to vector<8x256xf32>
    %56 = arith.addf %53, %55 : vector<8x256xf32>
    %cst_40 = arith.constant 0.000000e+00 : f32
    %57 = vector.broadcast %cst_40 : f32 to vector<8x256xf32>
    %58 = arith.maximumf %56, %57 : vector<8x256xf32>
    %59 = arith.truncf %58 : vector<8x256xf32> to vector<8x256xbf16>
    %c0_41 = arith.constant 0 : index
    %c0_42 = arith.constant 0 : index
    %60 = vector.load %arg12[%c0_41, %c0_42] : memref<256x256xbf16, #tpu.memory_space<vmem>>, vector<256x256xbf16>
    %cst_43 = arith.constant dense<0.000000e+00> : vector<8x256xf32>
    %61 = tpu.matmul %59, %60, %cst_43 {dimension_numbers = #tpu.dot_dimension_numbers<[1], [0], [0], [1], [0, 0, 1, 1], [], []>} : vector<8x256xbf16>, vector<256x256xbf16>, vector<8x256xf32> -> vector<8x256xf32>
    %c0_44 = arith.constant 0 : index
    %c0_45 = arith.constant 0 : index
    %62 = vector.load %arg13[%c0_44, %c0_45] : memref<1x256xf32, #tpu.memory_space<vmem>>, vector<1x256xf32>
    %63 = vector.broadcast %62 : vector<1x256xf32> to vector<8x256xf32>
    %64 = arith.addf %61, %63 : vector<8x256xf32>
    %cst_46 = arith.constant 0.000000e+00 : f32
    %65 = vector.broadcast %cst_46 : f32 to vector<8x256xf32>
    %66 = arith.maximumf %64, %65 : vector<8x256xf32>
    %67 = arith.truncf %66 : vector<8x256xf32> to vector<8x256xbf16>
    %c0_47 = arith.constant 0 : index
    %c0_48 = arith.constant 0 : index
    %68 = vector.load %arg14[%c0_47, %c0_48] : memref<256x128xbf16, #tpu.memory_space<vmem>>, vector<256x128xbf16>
    %cst_49 = arith.constant dense<0.000000e+00> : vector<8x128xf32>
    %69 = tpu.matmul %67, %68, %cst_49 {dimension_numbers = #tpu.dot_dimension_numbers<[1], [0], [0], [1], [0, 0, 1, 1], [], []>} : vector<8x256xbf16>, vector<256x128xbf16>, vector<8x128xf32> -> vector<8x128xf32>
    %c0_50 = arith.constant 0 : index
    %c0_51 = arith.constant 0 : index
    %70 = vector.load %arg15[%c0_50, %c0_51] : memref<1x128xf32, #tpu.memory_space<vmem>>, vector<1x128xf32>
    %71 = vector.broadcast %70 : vector<1x128xf32> to vector<8x128xf32>
    %72 = arith.addf %69, %71 : vector<8x128xf32>
    %cst_52 = arith.constant 0.000000e+00 : f32
    %73 = vector.broadcast %cst_52 : f32 to vector<8x128xf32>
    %74 = arith.maximumf %72, %73 : vector<8x128xf32>
    %75 = arith.truncf %74 : vector<8x128xf32> to vector<8x128xbf16>
    %c0_53 = arith.constant 0 : index
    %c0_54 = arith.constant 0 : index
    %76 = vector.load %arg16[%c0_53, %c0_54] : memref<128x128xbf16, #tpu.memory_space<vmem>>, vector<128x128xbf16>
    %cst_55 = arith.constant dense<0.000000e+00> : vector<8x128xf32>
    %77 = tpu.matmul %75, %76, %cst_55 {dimension_numbers = #tpu.dot_dimension_numbers<[1], [0], [0], [1], [0, 0, 1, 1], [], []>} : vector<8x128xbf16>, vector<128x128xbf16>, vector<8x128xf32> -> vector<8x128xf32>
    %c0_56 = arith.constant 0 : index
    %c0_57 = arith.constant 0 : index
    %78 = vector.load %arg17[%c0_56, %c0_57] : memref<1x128xf32, #tpu.memory_space<vmem>>, vector<1x128xf32>
    %79 = vector.broadcast %78 : vector<1x128xf32> to vector<8x128xf32>
    %80 = arith.addf %77, %79 : vector<8x128xf32>
    %81 = math.tanh %80 : vector<8x128xf32>
    %82 = arith.truncf %81 : vector<8x128xf32> to vector<8x128xbf16>
    %c0_58 = arith.constant 0 : index
    %c0_59 = arith.constant 0 : index
    %83 = vector.load %arg18[%c0_58, %c0_59] : memref<8x128xbf16, #tpu.memory_space<vmem>>, vector<8x128xbf16>
    tpu.vector_store %arg18[%c0_58, %c0_59], %82 {strides = array<i32>} : memref<8x128xbf16, #tpu.memory_space<vmem>>, vector<8x128xbf16>,
    return
  }
}

</mosaic_0001>

<bundles_post_ra>
// kernel: tpu_custom_call.1
= control target key start
LH: loop header
LB: loop body
LE: loop exit
PB: predicated region body
PF: predicated region fallthrough
CT: control target
= control target key end

     0   :  { %s2373_s0 = inlined_call_operand.hbm [shape: bf16[8,32], index: 0, kind: input, shape index: {}]   ;;  %s2374_s1 = inlined_call_operand.vmem [shape: f32[1,128], index: 1, kind: input, shape index: {}]   ;;  %s2375_s2 = inlined_call_operand.hbm [shape: bf16[128,128], index: 2, kind: input, shape index: {}]   ;;  %s2376_s3 = inlined_call_operand.vmem [shape: f32[1,128], index: 3, kind: input, shape index: {}]   ;;  %s2377_s4 = inlined_call_operand.hbm [shape: bf16[128,128], index: 4, kind: input, shape index: {}]   ;;  %s2378_s5 = inlined_call_operand.vmem [shape: f32[1,128], index: 5, kind: input, shape index: {}]   ;;  %s2379_s6 = inlined_call_operand.hbm [shape: bf16[128,128], index: 6, kind: input, shape index: {}]   ;;  %s2380_s7 = inlined_call_operand.vmem [shape: f32[1,128], index: 7, kind: input, shape index: {}]   ;;  %s2381_s8 = inlined_call_operand.hbm [shape: bf16[128,128], index: 8, kind: input, shape index: {}]   ;;  %s2382_s9 = inlined_call_operand.vmem [shape: f32[1,128], index: 9, kind: input, shape index: {}]   ;;  %s2383_s10 = inlined_call_operand.hbm [shape: bf16[128,256], index: 10, kind: input, shape index: {}]   ;;  %s2384_s11 = inlined_call_operand.vmem [shape: f32[1,256], index: 11, kind: input, shape index: {}]   ;;  %s2385_s12 = inlined_call_operand.hbm [shape: bf16[256,256], index: 12, kind: input, shape index: {}]   ;;  %s2386_s13 = inlined_call_operand.vmem [shape: f32[1,256], index: 13, kind: input, shape index: {}]   ;;  %s2387_s14 = inlined_call_operand.hbm [shape: bf16[256,128], index: 14, kind: input, shape index: {}]   ;;  %s2388_s15 = inlined_call_operand.vmem [shape: f32[1,128], index: 15, kind: input, shape index: {}]   ;;  %s2389_s16 = inlined_call_operand.hbm [shape: bf16[128,128], index: 16, kind: input, shape index: {}]   ;;  %s2390_s17 = inlined_call_operand.vmem [shape: f32[1,128], index: 17, kind: input, shape index: {}]   ;;  %s2391_s18 = inlined_call_operand.hbm [shape: bf16[8,128], index: 18, kind: output, shape index: {}]  }
   0x1   :  { %2395 = sst [smem:[#allocation25_spill]] %s2373_s0 }
   0x2   :  { %2396 = sst [smem:[#allocation26_spill]] %s2374_s1 }
   0x3   :  { %2397 = sst [smem:[#allocation27_spill]] %s2375_s2 }
   0x4   :  { %2398 = sst [smem:[#allocation28_spill]] %s2390_s17 }
   0x5   :  { %2399 = sst [smem:[#allocation29_spill]] %s2391_s18 }
   0x6   :  { %23 = vsyncpa [#allocation4], 0 }
   0x7   :  { %24 = vsyncpa [#allocation7], 0 }
   0x8   :  { %25 = vsyncpa [#allocation10], 0 }
   0x9   :  { %26 = vsyncpa [#allocation13], 0 }
   0xa   :  { %27 = vsyncpa [#allocation16], 0 }
   0xb   :  { %28 = vsyncpa [#allocation5], 0  ;;  %s2030_s27 = smov [#allocation6]   ;;  %s2400_s0 = sld [smem:[#allocation27_spill]] }
   0xc   :  { %s46_s28 = sshll.u32 %s2030_s27, 4  ;;  %s47_s28 = int_to_ptr.vmem [resolvable:$true] %s46_s28 }
  0x11   :  { %s1798_s19 = scalar_lea.hbm %s2400_s0, 1024 }
  0x12   :  { %p1799_p0 = scmp.ne.s32.totalorder %s2400_s0, %s1798_s19  ;;  %p1802_p1 = scmp.lt.u32.totalorder %s1798_s19, %s2400_s0 }
  0x14   :  { %p1804_p2 = pnand %p1802_p1, %p1799_p0 }
  0x16   :  { %1807 = shalt.err (!%p1804_p2)
}
  0x17   :  { %s1808_s2 = scalar_lea.vmem %s47_s28, 1024  ;;  %p1813_p4 = scmp.lt.s32.totalorder %s47_s28, %s47_s28 }
  0x18   :  { %p1809_p3 = scmp.ne.s32.totalorder %s47_s28, %s1808_s2  ;;  %p1814_p5 = scmp.lt.s32.totalorder %s1808_s2, %s1808_s2 }
  0x1a   :  { %p1815_p6 = por %p1814_p5, %p1813_p4 }
  0x1c   :  { %p1816_p7 = pnand %p1815_p6, %p1809_p3 }
  0x1e   :  { %1819 = shalt.err (!%p1816_p7)
}
  0x1f   :  { %s2031_s23 = smov 64   ;;  %s2032_s24 = smov 4  }
  0x20   :  { %52 = dma.hbm_to_vmem [thread:$0]  %s2400_s0, 1024, %s47_s28, [#allocation7], %s2031_s23, %s2031_s23, %s2032_s24  }
  0x21   :  { %s2033_s27 = smov [#allocation9]   ;;  %s2034_s30 = smov [#allocation12]  }
  0x22   :  { %s74_s29 = sshll.u32 %s2033_s27, 4  ;;  %s102_s19 = sshll.u32 %s2034_s30, 4  ;;  %s75_s29 = int_to_ptr.vmem [resolvable:$true] %s74_s29  ;;  %s103_s19 = int_to_ptr.vmem [resolvable:$true] %s102_s19 }
  0x23   :  { %s1820_s21 = scalar_lea.hbm %s2379_s6, 1024 }
  0x24   :  { %p1821_p8 = scmp.ne.s32.totalorder %s2379_s6, %s1820_s21  ;;  %p1824_p9 = scmp.lt.u32.totalorder %s1820_s21, %s2379_s6 }
  0x26   :  { %p1826_p10 = pnand %p1824_p9, %p1821_p8 }
  0x28   :  { %1829 = shalt.err (!%p1826_p10)
}
  0x29   :  { %s1830_s28 = scalar_lea.vmem %s75_s29, 1024  ;;  %p1835_p12 = scmp.lt.s32.totalorder %s75_s29, %s75_s29 }
  0x2a   :  { %p1831_p11 = scmp.ne.s32.totalorder %s75_s29, %s1830_s28  ;;  %p1836_p13 = scmp.lt.s32.totalorder %s1830_s28, %s1830_s28 }
  0x2c   :  { %p1837_p0 = por %p1836_p13, %p1835_p12 }
  0x2e   :  { %p1838_p1 = pnand %p1837_p0, %p1831_p11 }
  0x30   :  { %1841 = shalt.err (!%p1838_p1)
}
  0x31   :  { %80 = dma.hbm_to_vmem [thread:$0]  %s2379_s6, 1024, %s75_s29, [#allocation10], %s2031_s23, %s2031_s23, %s2032_s24  }
  0x32   :  { %s1842_s18 = scalar_lea.hbm %s2383_s10, 2048 }
  0x33   :  { %p1843_p2 = scmp.ne.s32.totalorder %s2383_s10, %s1842_s18  ;;  %p1846_p3 = scmp.lt.u32.totalorder %s1842_s18, %s2383_s10 }
  0x35   :  { %p1848_p4 = pnand %p1846_p3, %p1843_p2 }
  0x37   :  { %1851 = shalt.err (!%p1848_p4)
}
  0x38   :  { %s1852_s21 = scalar_lea.vmem %s103_s19, 2048  ;;  %p1857_p6 = scmp.lt.s32.totalorder %s103_s19, %s103_s19 }
  0x39   :  { %p1853_p5 = scmp.ne.s32.totalorder %s103_s19, %s1852_s21  ;;  %p1858_p7 = scmp.lt.s32.totalorder %s1852_s21, %s1852_s21 }
  0x3b   :  { %p1859_p8 = por %p1858_p7, %p1857_p6 }
  0x3d   :  { %p1860_p9 = pnand %p1859_p8, %p1853_p5 }
  0x3f   :  { %1863 = shalt.err (!%p1860_p9)
}
  0x40   :  { %s2035_s6 = smov 128   ;;  %s2036_s29 = smov 8  }
  0x41   :  { %108 = dma.hbm_to_vmem [thread:$0]  %s2383_s10, 2048, %s103_s19, [#allocation13], %s2035_s6, %s2035_s6, %s2036_s29  }
  0x42   :  { %s2037_s28 = smov [#allocation15]   ;;  %s2038_s25 = smov [#allocation3]  }
  0x43   :  { %s130_s0 = sshll.u32 %s2037_s28, 4  ;;  %s35_s26 = sshll.u32 %s2038_s25, 4  ;;  %s131_s0 = int_to_ptr.vmem [resolvable:$true] %s130_s0  ;;  %s36_s26 = int_to_ptr.vmem [resolvable:$true] %s35_s26 }
  0x44   :  { %s1864_s27 = scalar_lea.hbm %s2387_s14, 2048 }
  0x45   :  { %p1865_p10 = scmp.ne.s32.totalorder %s2387_s14, %s1864_s27  ;;  %p1868_p11 = scmp.lt.u32.totalorder %s1864_s27, %s2387_s14 }
  0x47   :  { %p1870_p12 = pnand %p1868_p11, %p1865_p10 }
  0x49   :  { %1873 = shalt.err (!%p1870_p12)
}
  0x4a   :  { %s1874_s10 = scalar_lea.vmem %s131_s0, 2048  ;;  %p1879_p0 = scmp.lt.s32.totalorder %s131_s0, %s131_s0 }
  0x4b   :  { %p1875_p13 = scmp.ne.s32.totalorder %s131_s0, %s1874_s10  ;;  %p1880_p1 = scmp.lt.s32.totalorder %s1874_s10, %s1874_s10 }
  0x4d   :  { %p1881_p2 = por %p1880_p1, %p1879_p0 }
  0x4f   :  { %p1882_p3 = pnand %p1881_p2, %p1875_p13 }
  0x51   :  { %1885 = shalt.err (!%p1882_p3)
}
  0x52   :  { %136 = dma.hbm_to_vmem [thread:$0]  %s2387_s14, 2048, %s131_s0, [#allocation16], %s2031_s23, %s2031_s23, %s2032_s24  }
  0x53   :  { %s2401_s25 = sld [smem:[#allocation25_spill]] }
  0x59   :  { %s1886_s17 = scalar_lea.hbm %s2401_s25, 64 }
  0x5a   :  { %p1887_p4 = scmp.ne.s32.totalorder %s2401_s25, %s1886_s17  ;;  %p1890_p5 = scmp.lt.u32.totalorder %s1886_s17, %s2401_s25 }
  0x5c   :  { %p1892_p6 = pnand %p1890_p5, %p1887_p4 }
  0x5e   :  { %1895 = shalt.err (!%p1892_p6)
}
  0x5f   :  { %s1896_s20 = scalar_lea.vmem %s36_s26, 64  ;;  %p1901_p8 = scmp.lt.s32.totalorder %s36_s26, %s36_s26 }
  0x60   :  { %p1897_p7 = scmp.ne.s32.totalorder %s36_s26, %s1896_s20  ;;  %p1902_p9 = scmp.lt.s32.totalorder %s1896_s20, %s1896_s20 }
  0x62   :  { %p1903_p10 = por %p1902_p9, %p1901_p8 }
  0x64   :  { %p1904_p11 = pnand %p1903_p10, %p1897_p7 }
  0x66   :  { %1907 = shalt.err (!%p1904_p11)
}
  0x67   :  { %38 = dma.hbm_to_vmem [thread:$0]  %s2401_s25, 64, %s36_s26, [#allocation4]  }
  0x68   :  { %s2039_s21 = smov [#allocation8]   ;;  %s2040_s19 = smov [#allocation11]  }
  0x69   :  { %s60_s10 = sshll.u32 %s2039_s21, 4  ;;  %s88_s22 = sshll.u32 %s2040_s19, 4  ;;  %s61_s10 = int_to_ptr.vmem [resolvable:$true] %s60_s10  ;;  %s89_s22 = int_to_ptr.vmem [resolvable:$true] %s88_s22 }
  0x6a   :  { %s1908_s17 = scalar_lea.hbm %s2377_s4, 1024 }
  0x6b   :  { %p1909_p12 = scmp.ne.s32.totalorder %s2377_s4, %s1908_s17  ;;  %p1912_p13 = scmp.lt.u32.totalorder %s1908_s17, %s2377_s4 }
  0x6d   :  { %p1914_p0 = pnand %p1912_p13, %p1909_p12 }
  0x6f   :  { %1917 = shalt.err (!%p1914_p0)
}
  0x70   :  { %s1918_s26 = scalar_lea.vmem %s61_s10, 1024  ;;  %p1923_p2 = scmp.lt.s32.totalorder %s61_s10, %s61_s10 }
  0x71   :  { %p1919_p1 = scmp.ne.s32.totalorder %s61_s10, %s1918_s26  ;;  %p1924_p3 = scmp.lt.s32.totalorder %s1918_s26, %s1918_s26 }
  0x73   :  { %p1925_p4 = por %p1924_p3, %p1923_p2 }
  0x75   :  { %p1926_p5 = pnand %p1925_p4, %p1919_p1 }
  0x77   :  { %1929 = shalt.err (!%p1926_p5)
}
  0x78   :  { %66 = dma.hbm_to_vmem [thread:$0]  %s2377_s4, 1024, %s61_s10, [#allocation7], %s2031_s23, %s2031_s23, %s2032_s24  }
  0x79   :  { %s1930_s21 = scalar_lea.hbm %s2381_s8, 1024 }
  0x7a   :  { %p1931_p6 = scmp.ne.s32.totalorder %s2381_s8, %s1930_s21  ;;  %p1934_p7 = scmp.lt.u32.totalorder %s1930_s21, %s2381_s8 }
  0x7c   :  { %p1936_p8 = pnand %p1934_p7, %p1931_p6 }
  0x7e   :  { %1939 = shalt.err (!%p1936_p8)
}
  0x7f   :  { %s1940_s18 = scalar_lea.vmem %s89_s22, 1024  ;;  %p1945_p10 = scmp.lt.s32.totalorder %s89_s22, %s89_s22 }
  0x80   :  { %p1941_p9 = scmp.ne.s32.totalorder %s89_s22, %s1940_s18  ;;  %p1946_p11 = scmp.lt.s32.totalorder %s1940_s18, %s1940_s18 }
  0x82   :  { %p1947_p12 = por %p1946_p11, %p1945_p10 }
  0x84   :  { %p1948_p13 = pnand %p1947_p12, %p1941_p9 }
  0x86   :  { %1951 = shalt.err (!%p1948_p13)
}
  0x87   :  { %94 = dma.hbm_to_vmem [thread:$0]  %s2381_s8, 1024, %s89_s22, [#allocation10], %s2031_s23, %s2031_s23, %s2032_s24  }
  0x88   :  { %s2041_s27 = smov [#allocation14]   ;;  %s2042_s1 = smov [#allocation17]  }
  0x89   :  { %s116_s30 = sshll.u32 %s2041_s27, 4  ;;  %s144_s26 = sshll.u32 %s2042_s1, 4  ;;  %s117_s30 = int_to_ptr.vmem [resolvable:$true] %s116_s30  ;;  %s145_s26 = int_to_ptr.vmem [resolvable:$true] %s144_s26 }
  0x8a   :  { %s1952_s14 = scalar_lea.hbm %s2385_s12, 4096 }
  0x8b   :  { %p1953_p0 = scmp.ne.s32.totalorder %s2385_s12, %s1952_s14  ;;  %p1956_p1 = scmp.lt.u32.totalorder %s1952_s14, %s2385_s12 }
  0x8d   :  { %p1958_p2 = pnand %p1956_p1, %p1953_p0 }
  0x8f   :  { %1961 = shalt.err (!%p1958_p2)
}
  0x90   :  { %s1962_s8 = scalar_lea.vmem %s117_s30, 4096  ;;  %p1967_p4 = scmp.lt.s32.totalorder %s117_s30, %s117_s30 }
  0x91   :  { %p1963_p3 = scmp.ne.s32.totalorder %s117_s30, %s1962_s8  ;;  %p1968_p5 = scmp.lt.s32.totalorder %s1962_s8, %s1962_s8 }
  0x93   :  { %p1969_p6 = por %p1968_p5, %p1967_p4 }
  0x95   :  { %p1970_p7 = pnand %p1969_p6, %p1963_p3 }
  0x97   :  { %1973 = shalt.err (!%p1970_p7)
}
  0x98   :  { %122 = dma.hbm_to_vmem [thread:$0]  %s2385_s12, 4096, %s117_s30, [#allocation13], %s2035_s6, %s2035_s6, %s2036_s29  }
  0x99   :  { %s1974_s4 = scalar_lea.hbm %s2389_s16, 1024 }
  0x9a   :  { %p1975_p8 = scmp.ne.s32.totalorder %s2389_s16, %s1974_s4  ;;  %p1978_p9 = scmp.lt.u32.totalorder %s1974_s4, %s2389_s16 }
  0x9c   :  { %p1980_p10 = pnand %p1978_p9, %p1975_p8 }
  0x9e   :  { %1983 = shalt.err (!%p1980_p10)
}
  0x9f   :  { %s1984_s20 = scalar_lea.vmem %s145_s26, 1024  ;;  %p1989_p12 = scmp.lt.s32.totalorder %s145_s26, %s145_s26 }
  0xa0   :  { %p1985_p11 = scmp.ne.s32.totalorder %s145_s26, %s1984_s20  ;;  %p1990_p13 = scmp.lt.s32.totalorder %s1984_s20, %s1984_s20 }
  0xa2   :  { %p1991_p0 = por %p1990_p13, %p1989_p12 }
  0xa4   :  { %p1992_p1 = pnand %p1991_p0, %p1985_p11 }
  0xa6   :  { %1995 = shalt.err (!%p1992_p1)
}
  0xa7   :  { %150 = dma.hbm_to_vmem [thread:$0]  %s2389_s16, 1024, %s145_s26, [#allocation16], %s2031_s23, %s2031_s23, %s2032_s24  }
  0xa8   :  { %2018 = dma.done.wait [#allocation4], 64  }
  0xa9   :  { %2019 = vsyncadd [#allocation4], 4294967232 }
  0xaa   :  { %2020 = dma.done.wait [#allocation7], 2048  }
  0xab   :  { %2021 = vsyncadd [#allocation7], 4294965248 }
  0xac   :  { %2022 = dma.done.wait [#allocation10], 2048  }
  0xad   :  { %2023 = vsyncadd [#allocation10], 4294965248 }
  0xae   :  { %2024 = dma.done.wait [#allocation13], 6144  }
  0xaf   :  { %2025 = vsyncadd [#allocation13], 4294961152 }
  0xb0   :  { %2026 = dma.done.wait [#allocation16], 3072  }
  0xb1   :  { %2027 = vsyncadd [#allocation16], 4294964224  ;;  %v2043_v0 = vmov 0.0   ;;  %vm2044_vm0 = vmmov 0   ;;  %v2045_v1 = vmov 0   ;;  %v1664_v2 = vld [vmem:[#allocation6] sm:$0xff]  }
  0xb2   :  { %1547 = vmatprep.subr.bf16.mxu0 %v2043_v0  ;;  %1563 = vmatprep.mubr.msk.bf16.mxu0 %vm2044_vm0, %v2043_v0  ;;  %181 = vst [vmem:[#allocation2] sm:$0xf] %v2045_v1  ;;  %v1665_v3 = vld [vmem:[#allocation6 + $0x8] sm:$0xff]   ;;  %v1666_v4 = vld [vmem:[#allocation6 + $0x10] sm:$0xff]   ;;  %vm183_vm1 = vcmask 257024   ;;  %v1672_v6 = vld [vmem:[#allocation8] sm:$0xff]  }
  0xb3   :  { %1567 = vmatprep.subr.bf16.mxu1 %v2043_v0  ;;  %1583 = vmatprep.mubr.msk.bf16.mxu1 %vm2044_vm0, %v2043_v0  ;;  %v182_v5 = vld [vmem:[#allocation3] sm:$0xf]  ;;  %v1673_v8 = vld [vmem:[#allocation8 + $0x8] sm:$0xff]   ;;  %v1668_v9 = vld [vmem:[#allocation6 + $0x20] sm:$0xff]   ;;  %s2402_s21 = sld [smem:[#allocation26_spill]]  ;;  %s2403_s28 = sld [smem:[#allocation28_spill]] }
  0xb4   :  { %1548 = vmatpush3.bf16.msra.mxu0 %v1664_v2  ;;  %184 = vst.msk [vmem:[#allocation2] sm:$0xf] %vm183_vm1, %v182_v5  ;;  %v1667_v7 = vld [vmem:[#allocation6 + $0x18] sm:$0xff]   ;;  %1568 = vmatpush3.bf16.msra.mxu1 %v1672_v6  ;;  %v1674_v10 = vld [vmem:[#allocation8 + $0x10] sm:$0xff]   ;;  %v1669_v11 = vld [vmem:[#allocation6 + $0x28] sm:$0xff]   ;;  %s2046_s17 = smov [#allocation18]  }
  0xb5   :  { %1549 = vmatprep.subr.bf16.mxu0 %v2043_v0  ;;  %1569 = vmatprep.subr.bf16.mxu1 %v2043_v0  ;;  %v1675_v12 = vld [vmem:[#allocation8 + $0x18] sm:$0xff]   ;;  %v1670_v13 = vld [vmem:[#allocation6 + $0x30] sm:$0xff]   ;;  %v1676_v14 = vld [vmem:[#allocation8 + $0x20] sm:$0xff]  }
  0xb6   :  { %v1671_v15 = vld [vmem:[#allocation6 + $0x38] sm:$0xff]   ;;  %v1677_v16 = vld [vmem:[#allocation8 + $0x28] sm:$0xff]   ;;  %v1678_v18 = vld [vmem:[#allocation8 + $0x30] sm:$0xff]  }
  0xb7   :  { %v1679_v19 = vld [vmem:[#allocation8 + $0x38] sm:$0xff]   ;;  %v1680_v20 = vld [vmem:[#allocation9] sm:$0xff]   ;;  %v1681_v21 = vld [vmem:[#allocation9 + $0x8] sm:$0xff]  }
  0xb8   :  { %1550 = vmatpush3.bf16.msra.mxu0 %v1665_v3  ;;  %1570 = vmatpush3.bf16.msra.mxu1 %v1673_v8  ;;  %v1682_v22 = vld [vmem:[#allocation9 + $0x10] sm:$0xff]   ;;  %v1683_v23 = vld [vmem:[#allocation9 + $0x18] sm:$0xff]   ;;  %v1684_v24 = vld [vmem:[#allocation9 + $0x20] sm:$0xff]  }
  0xb9   :  { %1551 = vmatprep.subr.bf16.mxu0 %v2043_v0  ;;  %1571 = vmatprep.subr.bf16.mxu1 %v2043_v0  ;;  %v1685_v25 = vld [vmem:[#allocation9 + $0x28] sm:$0xff]   ;;  %v1369_v26 = vld [vmem:[%s2376_s3] ss:$0 sm:$0xff]  ;;  %v1686_v34 = vld [vmem:[#allocation9 + $0x30] sm:$0xff]  }
  0xba   :  { %v1687_v35 = vld [vmem:[#allocation9 + $0x38] sm:$0xff]   ;;  %v1688_v36 = vld [vmem:[#allocation11] sm:$0xff]   ;;  %v1689_v37 = vld [vmem:[#allocation11 + $0x8] sm:$0xff]  }
  0xbb   :  { %v2292_v17 = vld [vmem:[#allocation2] sm:$0xf]  ;;  %v1690_v38 = vld [vmem:[#allocation11 + $0x10] sm:$0xff]   ;;  %v1692_v40 = vld [vmem:[#allocation11 + $0x20] sm:$0xff]  }
  0xbc   :  { %1552 = vmatpush3.bf16.msra.mxu0 %v1666_v4  ;;  %1572 = vmatpush3.bf16.msra.mxu1 %v1674_v10  ;;  %v1691_v39 = vld [vmem:[#allocation11 + $0x18] sm:$0xff]   ;;  %v1693_v41 = vld [vmem:[#allocation11 + $0x28] sm:$0xff]   ;;  %v1694_v50 = vld [vmem:[#allocation11 + $0x30] sm:$0xff]  }
  0xbd   :  { %1553 = vmatprep.subr.bf16.mxu0 %v2043_v0  ;;  %1573 = vmatprep.subr.bf16.mxu1 %v2043_v0  ;;  %v1378_v42 = vld [vmem:[%s2378_s5] ss:$0 sm:$0xff]  ;;  %v1696_v6 = vld [vmem:[#allocation12] ss:$8 sps:$4 sm:$0xff]   ;;  %v1701_v8 = vld [vmem:[#allocation12 + $0x14] ss:$8 sps:$4 sm:$0xff]  }
  0xbe   :  { %v1695_v51 = vld [vmem:[#allocation11 + $0x38] sm:$0xff]   ;;  %v1704_v10 = vld [vmem:[#allocation12 + $0x24] ss:$8 sps:$4 sm:$0xff]  }
  0xbf   :  { %v1387_v52 = vld [vmem:[%s2380_s7] ss:$0 sm:$0xff] }
  0xc0   :  { %1554 = vmatpush3.bf16.msra.mxu0 %v1667_v7  ;;  %1574 = vmatpush3.bf16.msra.mxu1 %v1675_v12  ;;  %v1396_v60 = vld [vmem:[%s2382_s9] ss:$0 sm:$0xff]  ;;  %v1698_v7 = vld [vmem:[#allocation12 + $0x4] ss:$8 sps:$4 sm:$0xff]   ;;  %v1707_v12 = vld [vmem:[#allocation12 + $0x34] ss:$8 sps:$4 sm:$0xff]  }
  0xc1   :  { %1555 = vmatprep.subr.bf16.mxu0 %v2043_v0  ;;  %1575 = vmatprep.subr.bf16.mxu1 %v2043_v0  ;;  %v1405_v2 = vld [vmem:[%s2402_s21] ss:$0 sm:$0xff] }
  0xc4   :  { %1556 = vmatpush3.bf16.msra.mxu0 %v1668_v9  ;;  %1576 = vmatpush3.bf16.msra.mxu1 %v1676_v14  ;;  %v1699_v9 = vld [vmem:[#allocation12 + $0x10] ss:$8 sps:$4 sm:$0xff]  }
  0xc5   :  { %1557 = vmatprep.subr.bf16.mxu0 %v2043_v0  ;;  %1577 = vmatprep.subr.bf16.mxu1 %v2043_v0 }
  0xc8   :  { %1558 = vmatpush3.bf16.msra.mxu0 %v1669_v11  ;;  %1578 = vmatpush3.bf16.msra.mxu1 %v1677_v16  ;;  %v1702_v11 = vld [vmem:[#allocation12 + $0x20] ss:$8 sps:$4 sm:$0xff]  }
  0xc9   :  { %1559 = vmatprep.subr.bf16.mxu0 %v2043_v0  ;;  %1579 = vmatprep.subr.bf16.mxu1 %v2043_v0 }
  0xcc   :  { %1560 = vmatpush3.bf16.msra.mxu0 %v1670_v13  ;;  %1580 = vmatpush3.bf16.msra.mxu1 %v1678_v18  ;;  %v1705_v13 = vld [vmem:[#allocation12 + $0x30] ss:$8 sps:$4 sm:$0xff]  }
  0xcd   :  { %1561 = vmatprep.subr.bf16.mxu0 %v2043_v0  ;;  %1581 = vmatprep.subr.bf16.mxu1 %v2043_v0 }
  0xd0   :  { %1562 = vmatpush3.bf16.msra.mxu0 %v1671_v15  ;;  %1582 = vmatpush3.bf16.msra.mxu1 %v1679_v19  ;;  %v1710_v19 = vld [vmem:[#allocation12 + $0x44] ss:$8 sps:$4 sm:$0xff]  }
  0xd1   :  { %1587 = vmatprep.subr.bf16.mxu0 %v2043_v0  ;;  %1607 = vmatprep.subr.bf16.mxu1 %v2043_v0 }
  0xd3   :  { %1564 = vmatmul.mubr.bf16.vlgmr.msra.gmra.mrb[0].mxu0 %v2292_v17 }
  0xd4   :  { %1603 = vmatprep.mubr.msk.bf16.mxu0 %vm2044_vm0, %v2043_v0  ;;  %1588 = vmatpush3.bf16.msra.mxu0 %v1680_v20  ;;  %v1708_v20 = vld [vmem:[#allocation12 + $0x40] ss:$8 sps:$4 sm:$0xff]  }
  0xd5   :  { %1589 = vmatprep.subr.bf16.mxu0 %v2043_v0 }
  0xd8   :  { %1590 = vmatpush3.bf16.msra.mxu0 %v1681_v21  ;;  %v1713_v21 = vld [vmem:[#allocation12 + $0x54] ss:$8 sps:$4 sm:$0xff]  }
  0xd9   :  { %1591 = vmatprep.subr.bf16.mxu0 %v2043_v0 }
  0xdc   :  { %1592 = vmatpush3.bf16.msra.mxu0 %v1682_v22  ;;  %v1711_v22 = vld [vmem:[#allocation12 + $0x50] ss:$8 sps:$4 sm:$0xff]  }
  0xdd   :  { %1593 = vmatprep.subr.bf16.mxu0 %v2043_v0 }
  0xe0   :  { %1594 = vmatpush3.bf16.msra.mxu0 %v1683_v23  ;;  %v1716_v23 = vld [vmem:[#allocation12 + $0x64] ss:$8 sps:$4 sm:$0xff]  }
  0xe1   :  { %1595 = vmatprep.subr.bf16.mxu0 %v2043_v0 }
  0xe4   :  { %1596 = vmatpush3.bf16.msra.mxu0 %v1684_v24  ;;  %v1714_v24 = vld [vmem:[#allocation12 + $0x60] ss:$8 sps:$4 sm:$0xff]  }
  0xe5   :  { %1597 = vmatprep.subr.bf16.mxu0 %v2043_v0 }
  0xe8   :  { %1598 = vmatpush3.bf16.msra.mxu0 %v1685_v25  ;;  %v1719_v25 = vld [vmem:[#allocation12 + $0x74] ss:$8 sps:$4 sm:$0xff]  }
  0xe9   :  { %1599 = vmatprep.subr.bf16.mxu0 %v2043_v0 }
  0xec   :  { %1600 = vmatpush3.bf16.msra.mxu0 %v1686_v34  ;;  %v1729_v34 = vld [vmem:[#allocation14 + $0x30] ss:$8 sps:$4 sm:$0xff]  }
  0xed   :  { %1601 = vmatprep.subr.bf16.mxu0 %v2043_v0 }
  0xf0   :  { %1602 = vmatpush3.bf16.msra.mxu0 %v1687_v35  ;;  %v1734_v35 = vld [vmem:[#allocation14 + $0x44] ss:$8 sps:$4 sm:$0xff]  }
  0xf1   :  { %765 = vmatprep.subr.bf16.mxu0 %v1698_v7  ;;  %v1774_v7 = vld [vmem:[#allocation15 + $0x58] sm:$0xff]  }
 0x1a6   :  { %v291_v27 = vpop.f32.mrb[0].mxu0 }
 0x1a7   :  { %v292_v28 = vadd.f32 %v1369_v26, %v291_v27  ;;  %v1565_v29 = vpop.f32.mrb[1].mxu0  ;;  %v1717_v26 = vld [vmem:[#allocation12 + $0x70] ss:$8 sps:$4 sm:$0xff]   ;;  %v1720_v27 = vld [vmem:[#allocation14] ss:$8 sps:$4 sm:$0xff]  }
 0x1a8   :  { %v294_v30 = vpop.f32.mrb[2].mxu0  ;;  %v1725_v29 = vld [vmem:[#allocation14 + $0x14] ss:$8 sps:$4 sm:$0xff]  }
 0x1a9   :  { %v297_v31 = vmax.f32 %v292_v28, 0.0  ;;  %v1566_v32 = vpop.f32.mrb[3].mxu0  ;;  %v1722_v28 = vld [vmem:[#allocation14 + $0x4] ss:$8 sps:$4 sm:$0xff]   ;;  %v1723_v30 = vld [vmem:[#allocation14 + $0x10] ss:$8 sps:$4 sm:$0xff]  }
 0x1aa   :  { %v1726_v32 = vld [vmem:[#allocation14 + $0x20] ss:$8 sps:$4 sm:$0xff]  }
 0x1ab   :  { %v298_v33 = vpack.c.bf16 %v297_v31, %v297_v31  ;;  %v1728_v31 = vld [vmem:[#allocation14 + $0x24] ss:$8 sps:$4 sm:$0xff]  }
 0x1ad   :  { %1584 = vmatmul.mubr.bf16.vlgmr.msra.gmra.mrb[0].mxu1 %v298_v33  ;;  %v1731_v33 = vld [vmem:[#allocation14 + $0x34] ss:$8 sps:$4 sm:$0xff]  }
 0x1ae   :  { %1623 = vmatprep.mubr.msk.bf16.mxu1 %vm2044_vm0, %v2043_v0  ;;  %1608 = vmatpush3.bf16.msra.mxu1 %v1688_v36  ;;  %v1732_v36 = vld [vmem:[#allocation14 + $0x40] ss:$8 sps:$4 sm:$0xff]  }
 0x1af   :  { %1609 = vmatprep.subr.bf16.mxu1 %v2043_v0 }
 0x1b2   :  { %1610 = vmatpush3.bf16.msra.mxu1 %v1689_v37  ;;  %v1737_v37 = vld [vmem:[#allocation14 + $0x54] ss:$8 sps:$4 sm:$0xff]  }
 0x1b3   :  { %1611 = vmatprep.subr.bf16.mxu1 %v2043_v0 }
 0x1b6   :  { %1612 = vmatpush3.bf16.msra.mxu1 %v1690_v38  ;;  %v1735_v38 = vld [vmem:[#allocation14 + $0x50] ss:$8 sps:$4 sm:$0xff]  }
 0x1b7   :  { %1613 = vmatprep.subr.bf16.mxu1 %v2043_v0 }
 0x1ba   :  { %1614 = vmatpush3.bf16.msra.mxu1 %v1691_v39  ;;  %v1740_v39 = vld [vmem:[#allocation14 + $0x64] ss:$8 sps:$4 sm:$0xff]  }
 0x1bb   :  { %1615 = vmatprep.subr.bf16.mxu1 %v2043_v0 }
 0x1be   :  { %1616 = vmatpush3.bf16.msra.mxu1 %v1692_v40  ;;  %v1738_v40 = vld [vmem:[#allocation14 + $0x60] ss:$8 sps:$4 sm:$0xff]  }
 0x1bf   :  { %1617 = vmatprep.subr.bf16.mxu1 %v2043_v0 }
 0x1c2   :  { %1618 = vmatpush3.bf16.msra.mxu1 %v1693_v41  ;;  %v1743_v41 = vld [vmem:[#allocation14 + $0x74] ss:$8 sps:$4 sm:$0xff]  }
 0x1c3   :  { %1619 = vmatprep.subr.bf16.mxu1 %v2043_v0 }
 0x1c6   :  { %1620 = vmatpush3.bf16.msra.mxu1 %v1694_v50  ;;  %v1753_v50 = vld [vmem:[#allocation14 + $0xb0] ss:$8 sps:$4 sm:$0xff]  }
 0x1c7   :  { %1621 = vmatprep.subr.bf16.mxu1 %v2043_v0 }
 0x1ca   :  { %1622 = vmatpush3.bf16.msra.mxu1 %v1695_v51  ;;  %v1758_v51 = vld [vmem:[#allocation14 + $0xc4] ss:$8 sps:$4 sm:$0xff]  }
 0x1cb   :  { %1014 = vmatprep.subr.bf16.mxu1 %v1722_v28 }
 0x280   :  { %v404_v43 = vpop.f32.mrb[0].mxu1 }
 0x281   :  { %v405_v44 = vadd.f32 %v1378_v42, %v404_v43  ;;  %v1585_v45 = vpop.f32.mrb[1].mxu1  ;;  %v1741_v42 = vld [vmem:[#allocation14 + $0x70] ss:$8 sps:$4 sm:$0xff]   ;;  %v1746_v43 = vld [vmem:[#allocation14 + $0x84] ss:$8 sps:$4 sm:$0xff]  }
 0x282   :  { %v407_v46 = vpop.f32.mrb[2].mxu1  ;;  %v1749_v45 = vld [vmem:[#allocation14 + $0x94] ss:$8 sps:$4 sm:$0xff]  }
 0x283   :  { %v410_v47 = vmax.f32 %v405_v44, 0.0  ;;  %v1586_v48 = vpop.f32.mrb[3].mxu1  ;;  %v1744_v44 = vld [vmem:[#allocation14 + $0x80] ss:$8 sps:$4 sm:$0xff]   ;;  %v1747_v46 = vld [vmem:[#allocation14 + $0x90] ss:$8 sps:$4 sm:$0xff]  }
 0x284   :  { %v1750_v48 = vld [vmem:[#allocation14 + $0xa0] ss:$8 sps:$4 sm:$0xff]  }
 0x285   :  { %v411_v49 = vpack.c.bf16 %v410_v47, %v410_v47  ;;  %v1752_v47 = vld [vmem:[#allocation14 + $0xa4] ss:$8 sps:$4 sm:$0xff]  }
 0x287   :  { %1604 = vmatmul.mubr.bf16.vlgmr.msra.gmra.mrb[4].mxu0 %v411_v49  ;;  %v1755_v49 = vld [vmem:[#allocation14 + $0xb4] ss:$8 sps:$4 sm:$0xff]  }
 0x288   :  { %797 = vmatprep.mubr.bf16.mxu0 %v2045_v1  ;;  %766 = vmatpush1.bf16.msra.mxu0 %v1696_v6  ;;  %v1773_v6 = vld [vmem:[#allocation15 + $0x10] sm:$0xff]  }
 0x289   :  { %767 = vmatprep.subr.bf16.mxu0 %v1701_v8  ;;  %v1775_v8 = vld [vmem:[#allocation15 + $0x18] sm:$0xff]  }
 0x28c   :  { %768 = vmatpush1.bf16.msra.mxu0 %v1699_v9  ;;  %v1776_v9 = vld [vmem:[#allocation15 + $0x60] sm:$0xff]  }
 0x28d   :  { %769 = vmatprep.subr.bf16.mxu0 %v1704_v10  ;;  %v1777_v10 = vld [vmem:[#allocation15 + $0x20] sm:$0xff]  }
 0x290   :  { %770 = vmatpush1.bf16.msra.mxu0 %v1702_v11  ;;  %v1778_v11 = vld [vmem:[#allocation15 + $0x68] sm:$0xff]  }
 0x291   :  { %771 = vmatprep.subr.bf16.mxu0 %v1707_v12  ;;  %v1779_v12 = vld [vmem:[#allocation15 + $0x28] sm:$0xff]  }
 0x294   :  { %772 = vmatpush1.bf16.msra.mxu0 %v1705_v13  ;;  %v675_v13 = vlaneseq }
 0x295   :  { %773 = vmatprep.subr.bf16.mxu0 %v1710_v19 }
 0x298   :  { %774 = vmatpush1.bf16.msra.mxu0 %v1708_v20 }
 0x299   :  { %775 = vmatprep.subr.bf16.mxu0 %v1713_v21 }
 0x29c   :  { %776 = vmatpush1.bf16.msra.mxu0 %v1711_v22 }
 0x29d   :  { %777 = vmatprep.subr.bf16.mxu0 %v1716_v23 }
 0x2a0   :  { %778 = vmatpush1.bf16.msra.mxu0 %v1714_v24 }
 0x2a1   :  { %779 = vmatprep.subr.bf16.mxu0 %v1719_v25 }
 0x2a4   :  { %780 = vmatpush1.bf16.msra.mxu0 %v1717_v26 }
 0x35a   :  { %v517_v53 = vpop.f32.mrb[4].mxu0 }
 0x35b   :  { %v518_v54 = vadd.f32 %v1387_v52, %v517_v53  ;;  %v1605_v55 = vpop.f32.mrb[5].mxu0  ;;  %v1756_v52 = vld [vmem:[#allocation14 + $0xc0] ss:$8 sps:$4 sm:$0xff]   ;;  %v1761_v53 = vld [vmem:[#allocation14 + $0xd4] ss:$8 sps:$4 sm:$0xff]  }
 0x35c   :  { %v520_v56 = vpop.f32.mrb[6].mxu0 }
 0x35d   :  { %v523_v57 = vmax.f32 %v518_v54, 0.0  ;;  %v1606_v58 = vpop.f32.mrb[7].mxu0  ;;  %v1759_v54 = vld [vmem:[#allocation14 + $0xd0] ss:$8 sps:$4 sm:$0xff]   ;;  %v654_v56 = vunpack.c.l.bf16 %v2292_v17  ;;  %v1771_v17 = vld [vmem:[#allocation15 + $0x8] sm:$0xff]  }
 0x35f   :  { %v524_v59 = vpack.c.bf16 %v523_v57, %v523_v57 }
 0x361   :  { %1624 = vmatmul.mubr.bf16.vlgmr.msra.gmra.mrb[4].mxu1 %v524_v59 }
 0x362   :  { %1015 = vmatpush1.bf16.msra.mxu1 %v1720_v27 }
 0x363   :  { %1016 = vmatprep.subr.bf16.mxu1 %v1725_v29 }
 0x366   :  { %1017 = vmatpush1.bf16.msra.mxu1 %v1723_v30 }
 0x367   :  { %1018 = vmatprep.subr.bf16.mxu1 %v1728_v31  ;;  %v1780_v31 = vld [vmem:[#allocation15 + $0x70] sm:$0xff]  }
 0x36a   :  { %1019 = vmatpush1.bf16.msra.mxu1 %v1726_v32  ;;  %v1781_v32 = vld [vmem:[#allocation15 + $0x30] sm:$0xff]  }
 0x36b   :  { %1020 = vmatprep.subr.bf16.mxu1 %v1731_v33  ;;  %v1782_v33 = vld [vmem:[#allocation15 + $0x78] sm:$0xff]  }
 0x36e   :  { %1021 = vmatpush1.bf16.msra.mxu1 %v1729_v34  ;;  %v1783_v34 = vld [vmem:[#allocation15 + $0x38] sm:$0xff]  }
 0x36f   :  { %1022 = vmatprep.subr.bf16.mxu1 %v1734_v35  ;;  %v842_v35 = vld [vmem:[%s2386_s13] sm:$0x3] }
 0x372   :  { %1023 = vmatpush1.bf16.msra.mxu1 %v1732_v36 }
 0x373   :  { %1024 = vmatprep.subr.bf16.mxu1 %v1737_v37 }
 0x376   :  { %1025 = vmatpush1.bf16.msra.mxu1 %v1735_v38 }
 0x377   :  { %1026 = vmatprep.subr.bf16.mxu1 %v1740_v39 }
 0x37a   :  { %1027 = vmatpush1.bf16.msra.mxu1 %v1738_v40 }
 0x37b   :  { %1028 = vmatprep.subr.bf16.mxu1 %v1743_v41 }
 0x37e   :  { %1029 = vmatpush1.bf16.msra.mxu1 %v1741_v42 }
 0x37f   :  { %1030 = vmatprep.subr.bf16.mxu1 %v1746_v43 }
 0x382   :  { %1031 = vmatpush1.bf16.msra.mxu1 %v1744_v44 }
 0x383   :  { %1032 = vmatprep.subr.bf16.mxu1 %v1749_v45 }
 0x386   :  { %1033 = vmatpush1.bf16.msra.mxu1 %v1747_v46 }
 0x387   :  { %1034 = vmatprep.subr.bf16.mxu1 %v1752_v47  ;;  %v1784_v47 = vld [vmem:[#allocation17] sm:$0xff]  }
 0x38a   :  { %1035 = vmatpush1.bf16.msra.mxu1 %v1750_v48 }
 0x38b   :  { %1036 = vmatprep.subr.bf16.mxu1 %v1755_v49  ;;  %v1785_v49 = vld [vmem:[#allocation17 + $0x8] sm:$0xff]  }
 0x38e   :  { %1037 = vmatpush1.bf16.msra.mxu1 %v1753_v50  ;;  %v1786_v50 = vld [vmem:[#allocation17 + $0x10] sm:$0xff]  }
 0x38f   :  { %1038 = vmatprep.subr.bf16.mxu1 %v1758_v51  ;;  %v1787_v51 = vld [vmem:[#allocation17 + $0x18] sm:$0xff]  }
 0x392   :  { %1039 = vmatpush1.bf16.msra.mxu1 %v1756_v52  ;;  %v1788_v52 = vld [vmem:[#allocation17 + $0x20] sm:$0xff]  }
 0x393   :  { %1040 = vmatprep.subr.bf16.mxu1 %v1761_v53  ;;  %v1789_v53 = vld [vmem:[#allocation17 + $0x28] sm:$0xff]  }
 0x396   :  { %1041 = vmatpush1.bf16.msra.mxu1 %v1759_v54  ;;  %v1790_v54 = vld [vmem:[#allocation17 + $0x30] sm:$0xff]  }
 0x434   :  { %v630_v61 = vpop.f32.mrb[4].mxu1 }
 0x435   :  { %v631_v62 = vadd.f32 %v1396_v60, %v630_v61  ;;  %v1625_v63 = vpop.f32.mrb[5].mxu1  ;;  %v1764_v61 = vld [vmem:[#allocation14 + $0xe4] ss:$8 sps:$4 sm:$0xff]  }
 0x436   :  { %v633_v1 = vpop.f32.mrb[6].mxu1  ;;  %1042 = vmatprep.subr.bf16.mxu1 %v1764_v61  ;;  %v1767_v63 = vld [vmem:[#allocation14 + $0xf4] ss:$8 sps:$4 sm:$0xff]  }
 0x437   :  { %v636_v3 = vmax.f32 %v631_v62, 0.0  ;;  %v1626_v4 = vpop.f32.mrb[7].mxu1  ;;  %v1762_v62 = vld [vmem:[#allocation14 + $0xe0] ss:$8 sps:$4 sm:$0xff]   ;;  %v1765_v1 = vld [vmem:[#allocation14 + $0xf0] ss:$8 sps:$4 sm:$0xff]  }
 0x438   :  { %1043 = vmatpush1.bf16.msra.mxu1 %v1762_v62  ;;  %v1770_v4 = vld [vmem:[#allocation15 + $0x48] sm:$0xff]  }
 0x439   :  { %v644_v5 = vadd.f32 %v1405_v2, %v636_v3  ;;  %1044 = vmatprep.subr.bf16.mxu1 %v1767_v63  ;;  %v1768_v2 = vld [vmem:[#allocation15 + $0x40] sm:$0xff]  }
 0x43a   :  { %v1769_v3 = vld [vmem:[#allocation15] sm:$0xff]   ;;  %1516 = vmatprep.subr.bf16.mxu0 %v1768_v2  ;;  %v1471_v2 = vld [vmem:[%s2403_s28] ss:$0 sm:$0xff] }
 0x43b   :  { %645 = vmax.xlane.f32.xlu0 %v644_v5 }
 0x43c   :  { %1045 = vmatpush1.bf16.msra.mxu1 %v1765_v1 }
 0x4c8   :  { %v646_v14 = vpop.xlane.xlu0 %645 }
 0x4c9   :  { %v647_v15 = vsub.f32 %v644_v5, %v646_v14  ;;  %v1772_v5 = vld [vmem:[#allocation15 + $0x50] sm:$0xff]   ;;  %v676_v14 = vshrl.u32 %v675_v13, 7 }
 0x4cb   :  { %v648_v16 = vmul.f32 1.442695, %v647_v15  ;;  %v677_v15 = vsub.s32 0, %v676_v14 }
 0x4cd   :  { %1792 = vpow2.f32 %v648_v16  ;;  %v673_v16 = vld [vmem:[%s2384_s11] sm:$0x3]  ;;  %v847_v36 = vrot.slane %v842_v35, %v677_v15 }
 0x4ce   :  { %v678_v19 = vrot.slane %v673_v16, %v677_v15 }
 0x4d7   :  { %v2334_v18 = vpop.eup %1792 }
 0x4d8   :  { %650 = vadd.xlane.f32.xlu0 %v2334_v18 }
 0x565   :  { %v651_v55 = vpop.xlane.xlu0 %650 }
 0x566   :  { %1794 = vrcp.f32 %v651_v55  ;;  %v1791_v55 = vld [vmem:[#allocation17 + $0x38] sm:$0xff]  }
 0x570   :  { %v1795_v57 = vpop.eup %1794 }
 0x571   :  { %v653_v58 = vmul.f32 %v1795_v57, %v2334_v18  ;;  %v681_v18 = vsub.s32 1, %v676_v14  ;;  %v1454_v57 = vld [vmem:[%s2388_s15] ss:$0 sm:$0xff]  ;;  %s1356_s15 = sshll.u32 %s2046_s17, 4  ;;  %s1357_s15 = int_to_ptr.vmem [resolvable:$true] %s1356_s15 }
 0x572   :  { %s1996_s18 = scalar_lea.vmem %s1357_s15, 64  ;;  %p2001_p3 = scmp.lt.s32.totalorder %s1357_s15, %s1357_s15 }
 0x573   :  { %v655_v59 = vmul.f32 %v654_v56, %v653_v58  ;;  %v682_v20 = vrot.slane %v673_v16, %v681_v18  ;;  %v851_v37 = vrot.slane %v842_v35, %v681_v18  ;;  %p1997_p2 = scmp.ne.s32.totalorder %s1357_s15, %s1996_s18  ;;  %p2002_p4 = scmp.lt.s32.totalorder %s1996_s18, %s1996_s18 }
 0x575   :  { %v656_v60 = vpack.c.bf16 %v655_v59, %v655_v59  ;;  %p2003_p5 = por %p2002_p4, %p2001_p3 }
 0x577   :  { %798 = vmatmul.mubr.bf16.vlgmr.msra.gmra.mrb[8].mxu0 %v656_v60  ;;  %p2004_p6 = pnand %p2003_p5, %p1997_p2 }
 0x578   :  { %1517 = vmatpush3.bf16.msra.mxu0 %v1769_v3 }
 0x579   :  { %1518 = vmatprep.subr.bf16.mxu0 %v1770_v4 }
 0x57c   :  { %1519 = vmatpush3.bf16.msra.mxu0 %v1771_v17 }
 0x57d   :  { %1520 = vmatprep.subr.bf16.mxu0 %v1772_v5 }
 0x580   :  { %1521 = vmatpush3.bf16.msra.mxu0 %v1773_v6 }
 0x581   :  { %1522 = vmatprep.subr.bf16.mxu0 %v1774_v7 }
 0x584   :  { %1523 = vmatpush3.bf16.msra.mxu0 %v1775_v8 }
 0x585   :  { %1524 = vmatprep.subr.bf16.mxu0 %v1776_v9 }
 0x588   :  { %1525 = vmatpush3.bf16.msra.mxu0 %v1777_v10 }
 0x589   :  { %1526 = vmatprep.subr.bf16.mxu0 %v1778_v11 }
 0x58c   :  { %1527 = vmatpush3.bf16.msra.mxu0 %v1779_v12 }
 0x58d   :  { %1528 = vmatprep.subr.bf16.mxu0 %v1780_v31 }
 0x590   :  { %1529 = vmatpush3.bf16.msra.mxu0 %v1781_v32 }
 0x591   :  { %1530 = vmatprep.subr.bf16.mxu0 %v1782_v33 }
 0x594   :  { %1531 = vmatpush3.bf16.msra.mxu0 %v1783_v34 }
 0x595   :  { %1627 = vmatprep.subr.bf16.mxu0 %v2043_v0 }
 0x64a   :  { %v799_v21 = vpop.f32.mrb[8].mxu0 }
 0x64b   :  { %v800_v22 = vadd.f32 %v799_v21, %v678_v19  ;;  %v801_v23 = vpop.f32.mrb[9].mxu0 }
 0x64c   :  { %v802_v24 = vadd.f32 %v801_v23, %v682_v20  ;;  %v803_v25 = vpop.f32.mrb[10].mxu0 }
 0x64d   :  { %v806_v26 = vmax.f32 %v800_v22, 0.0  ;;  %v804_v27 = vpop.f32.mrb[11].mxu0 }
 0x64e   :  { %v807_v28 = vmax.f32 %v802_v24, 0.0 }
 0x64f   :  { %v808_v30 = vpack.c.bf16 %v806_v26, %v806_v26 }
 0x650   :  { %v809_v29 = vpack.c.bf16 %v807_v28, %v807_v28 }
 0x652   :  { %1046 = vmatprep.mubr.bf16.mxu1 %v809_v29 }
 0x653   :  { %1047 = vmatmul.mubr.bf16.vlgmr.msra.gmra.mrb[8].mxu1 %v808_v30 }
 0x726   :  { %v1048_v38 = vpop.f32.mrb[8].mxu1 }
 0x727   :  { %v1049_v39 = vadd.f32 %v1048_v38, %v847_v36  ;;  %v1050_v40 = vpop.f32.mrb[9].mxu1 }
 0x728   :  { %v1051_v41 = vadd.f32 %v1050_v40, %v851_v37  ;;  %v1052_v42 = vpop.f32.mrb[10].mxu1 }
 0x729   :  { %v1055_v43 = vmax.f32 %v1049_v39, 0.0  ;;  %v1053_v44 = vpop.f32.mrb[11].mxu1 }
 0x72a   :  { %v1056_v45 = vmax.f32 %v1051_v41, 0.0 }
 0x72b   :  { %v1057_v48 = vpack.c.bf16 %v1055_v43, %v1055_v43 }
 0x72c   :  { %v1058_v46 = vpack.c.bf16 %v1056_v45, %v1056_v45 }
 0x72e   :  { %1226 = vmatprep.mubr.bf16.mxu0 %v1058_v46 }
 0x72f   :  { %1227 = vmatmul.mubr.bf16.vlgmr.msra.gmra.mrb[12].mxu0 %v1057_v48 }
 0x730   :  { %1628 = vmatpush3.bf16.msra.mxu0 %v1784_v47  ;;  %1643 = vmatprep.mubr.msk.bf16.mxu0 %vm2044_vm0, %v2043_v0 }
 0x731   :  { %1629 = vmatprep.subr.bf16.mxu0 %v2043_v0 }
 0x734   :  { %1630 = vmatpush3.bf16.msra.mxu0 %v1785_v49 }
 0x735   :  { %1631 = vmatprep.subr.bf16.mxu0 %v2043_v0 }
 0x738   :  { %1632 = vmatpush3.bf16.msra.mxu0 %v1786_v50 }
 0x739   :  { %1633 = vmatprep.subr.bf16.mxu0 %v2043_v0 }
 0x73c   :  { %1634 = vmatpush3.bf16.msra.mxu0 %v1787_v51 }
 0x73d   :  { %1635 = vmatprep.subr.bf16.mxu0 %v2043_v0 }
 0x740   :  { %1636 = vmatpush3.bf16.msra.mxu0 %v1788_v52 }
 0x741   :  { %1637 = vmatprep.subr.bf16.mxu0 %v2043_v0 }
 0x744   :  { %1638 = vmatpush3.bf16.msra.mxu0 %v1789_v53 }
 0x745   :  { %1639 = vmatprep.subr.bf16.mxu0 %v2043_v0 }
 0x748   :  { %1640 = vmatpush3.bf16.msra.mxu0 %v1790_v54 }
 0x749   :  { %1641 = vmatprep.subr.bf16.mxu0 %v2043_v0 }
 0x74c   :  { %1642 = vmatpush3.bf16.msra.mxu0 %v1791_v55 }
 0x802   :  { %v1532_v56 = vpop.f32.mrb[12].mxu0 }
 0x803   :  { %v1533_v58 = vpop.f32.mrb[13].mxu0 }
 0x804   :  { %v1534_v59 = vadd.f32 %v1533_v58, %v1532_v56  ;;  %v1535_v60 = vpop.f32.mrb[14].mxu0 }
 0x805   :  { %v1536_v61 = vpop.f32.mrb[15].mxu0 }
 0x806   :  { %v1229_v62 = vadd.f32 %v1534_v59, %v1454_v57 }
 0x808   :  { %v1234_v63 = vmax.f32 %v1229_v62, 0.0 }
 0x80a   :  { %v1235_v1 = vpack.c.bf16 %v1234_v63, %v1234_v63 }
 0x80c   :  { %1644 = vmatmul.mubr.bf16.vlgmr.msra.gmra.mrb[16].mxu0 %v1235_v1 }
 0x8df   :  { %v1341_v0 = vpop.f32.mrb[16].mxu0 }
 0x8e0   :  { %v1342_v3 = vadd.f32 %v1471_v2, %v1341_v0  ;;  %v1645_v4 = vpop.f32.mrb[17].mxu0 }
 0x8e1   :  { %v1344_v17 = vpop.f32.mrb[18].mxu0 }
 0x8e2   :  { %1796 = vtanh.f32 %v1342_v3  ;;  %v1646_v5 = vpop.f32.mrb[19].mxu0 }
 0x8ec   :  { %v1797_v6 = vpop.eup %1796 }
 0x8ed   :  { %v1348_v7 = vpack.c.bf16 %v1797_v6, %v1797_v6 }
 0x8ef   :  { %1349 = vst [vmem:[#allocation18] sm:$0xf] %v1348_v7 }
 0x8f0   :  { %2007 = shalt.err (!%p2004_p6)
}
 0x8f1   :  { %s2404_s27 = sld [smem:[#allocation29_spill]] }
 0x8f7   :  { %s2008_s1 = scalar_lea.hbm %s2404_s27, 64 }
 0x8f8   :  { %p2009_p7 = scmp.ne.s32.totalorder %s2404_s27, %s2008_s1  ;;  %p2012_p8 = scmp.lt.u32.totalorder %s2008_s1, %s2404_s27 }
 0x8fa   :  { %p2014_p9 = pnand %p2012_p8, %p2009_p7 }
 0x8fc   :  { %2017 = shalt.err (!%p2014_p9)
}
 0x8fd   :  { %1359 = dma.vmem_to_hbm [thread:$0]  %s1357_s15, 64, %s2404_s27, [#allocation5]  }
 0x8fe   :  { %2028 = dma.done.wait [#allocation5], 64  }
 0x8ff   :  { %2029 = vsyncadd [#allocation5], 4294967232 }
 0x900   :  { %1363 = vsyncpa [#allocation4], 1 }
 0x901   :  { %1364 = vsyncpa [#allocation7], 1 }
 0x902   :  { %1365 = vsyncpa [#allocation10], 1 }
 0x903   :  { %1366 = vsyncpa [#allocation13], 1 }
 0x904   :  { %1367 = vsyncpa [#allocation16], 1 }
 0x905   :  { %1368 = vsyncpa [#allocation5], 1 }

</bundles_post_ra>
